<compile_context>
chip_gen: v6e
topology: v6e:2x2x1
jax: 0.10.0
libtpu: 0.0.40
codegen_flags: <defaults>
</compile_context>

<pallas_src>
import functools

import numpy as np
import jax
import jax.numpy as jnp
from jax import lax
from jax.experimental import pallas as pl
from jax.experimental.pallas import tpu as pltpu

N = 16                          # from the PyTorch module
L0 = 2 * N                      # 32  : linear output width / conv1 input len
L1 = 2 * N + 1                  # 33  : conv1 output length (per channel)
W1P = ((2 * L1 + 7) // 8) * 8   # 72  : conv1 flattened width (66) padded to 8
W2 = 4 * N                      # 64  : conv2/conv3 flattened width
BLANE = 128                     # lane stride between biases in the bias slab


def _rup8(v):
    return ((v + 7) // 8) * 8


# --------------------------------------------------------------------------
# Kernel: full forward pass for one batch tile — 5 matmuls + 5 activations.
# All weights come from one packed slab (static, 8-aligned row bands) and all
# biases from one packed row (static, 128-aligned lane bands).
# --------------------------------------------------------------------------
def _model_kernel(x_ref, w_ref, b_ref, out_ref, *, T, o1, o2, o3, o4):
    f32 = jnp.float32

    def sig(z):
        # sigmoid(z) == 0.5 * tanh(0.5 * z) + 0.5  -> single EUP op + VPU fma
        return 0.5 * jnp.tanh(0.5 * z) + 0.5

    x = x_ref[...].astype(f32)                                          # (tb, T)

    # Linear + sigmoid                                                    (tb, 32)
    h = sig(jnp.dot(x, w_ref[0:T, 0:L0], preferred_element_type=f32)
            + b_ref[0:1, 0:L0])

    # conv1 (1->2, k=4, s=1, p=2) as one banded matmul, channels packed;
    # columns 66..71 are zero-padding (sigmoid(0)=0.5, killed by zero rows
    # of the next matrix).                                                (tb, 72)
    h = sig(jnp.dot(h, w_ref[o1:o1 + L0, 0:W1P], preferred_element_type=f32)
            + b_ref[0:1, BLANE:BLANE + W1P])

    # conv2 (2->4, k=2, s=2) as one block-banded matmul                   (tb, 64)
    h = sig(jnp.dot(h, w_ref[o2:o2 + W1P, 0:W2], preferred_element_type=f32)
            + b_ref[0:1, 2 * BLANE:2 * BLANE + W2])

    # conv3 (4->4, k=1) as a per-position channel-mix matmul              (tb, 64)
    h = sig(jnp.dot(h, w_ref[o3:o3 + W2, 0:W2], preferred_element_type=f32)
            + b_ref[0:1, 3 * BLANE:3 * BLANE + W2])

    # conv4 (4->1, k=1) + tanh, real width N only                         (tb, 16)
    y = jnp.tanh(jnp.dot(h, w_ref[o4:o4 + W2, 0:N], preferred_element_type=f32)
                 + b_ref[0:1, 4 * BLANE:4 * BLANE + N])

    out_ref[...] = y.astype(out_ref.dtype)


# --------------------------------------------------------------------------
# Wrapper
# --------------------------------------------------------------------------
def model_forward(x, kp, *, tb=1024):
    B, T = x.shape
    T_k, o1, o2, o3, o4 = kp["offs"]
    assert T_k == T, (T_k, T)
    wslab, bslab = kp["wslab"], kp["bslab"]
    R = wslab.shape[0]

    # Tile-size policy: big tiles to amortize per-step overhead, clamped to
    # the (8-rounded) batch, and clamped so B >= 16 always yields >= 2 grid
    # steps ("parallel" axis -> both TensorCores on v7x).
    tb = min(int(tb), _rup8(B))
    if B >= 16:
        tb = min(tb, _rup8(pl.cdiv(B, 2)))
    tb = max(8, _rup8(tb))
    n_tiles = pl.cdiv(B, tb)   # ragged last tile: Pallas masks OOB output rows

    kernel = functools.partial(_model_kernel, T=T, o1=o1, o2=o2, o3=o3, o4=o4)

    flops = 2 * B * (T * L0 + L0 * W1P + W1P * W2 + W2 * W2 + W2 * N)
    transcendentals = B * (L0 + W1P + W2 + W2 + N)
    bytes_accessed = 4 * (B * T + B * N) + 4 * (int(wslab.size) + int(bslab.size))

    out = pl.pallas_call(
        kernel,
        out_shape=jax.ShapeDtypeStruct((B, N), jnp.float32),
        grid_spec=pltpu.PrefetchScalarGridSpec(
            num_scalar_prefetch=0,
            grid=(n_tiles,),
            in_specs=[
                pl.BlockSpec((tb, T), lambda b: (b, 0)),             # x tile
                pl.BlockSpec((R, 128), lambda b: (0, 0)),            # weight slab
                pl.BlockSpec(bslab.shape, lambda b: (0, 0)),         # bias slab
            ],
            out_specs=pl.BlockSpec((tb, N), lambda b: (b, 0)),
        ),
        compiler_params=pltpu.CompilerParams(dimension_semantics=("parallel",)),
        cost_estimate=pl.CostEstimate(
            flops=int(flops),
            transcendentals=int(transcendentals),
            bytes_accessed=int(bytes_accessed)),
    )(x, wslab, bslab)
    return out


# --------------------------------------------------------------------------
# Host-side pre-baking: convs -> dense channel-packed matrices, then all
# weights packed into one slab (8-aligned row bands, 128 lanes) and all
# biases into one slab (128-lane-aligned bands). One-time glue work.
# --------------------------------------------------------------------------
def prepare_kernel_params(p):
    wlin = np.asarray(p["wlin"], np.float32)            # (32, T)
    blin = np.asarray(p["blin"], np.float32)            # (32,)
    w1 = np.asarray(p["w1"], np.float32); b1 = np.asarray(p["b1"], np.float32)
    w2 = np.asarray(p["w2"], np.float32); b2 = np.asarray(p["b2"], np.float32)
    w3 = np.asarray(p["w3"], np.float32); b3 = np.asarray(p["b3"], np.float32)
    w4 = np.asarray(p["w4"], np.float32); b4 = np.asarray(p["b4"], np.float32)
    T = wlin.shape[1]
    L2 = N

    # conv1 (1->2, k=4, s=1, p=2): (tb,32) @ (32,72); column o*L1+t,
    # cross-correlation with padding 2 -> input row i = t + j - 2.
    m1 = np.zeros((L0, W1P), np.float32)
    b1v = np.zeros((W1P,), np.float32)
    for o in range(2):
        b1v[o * L1:(o + 1) * L1] = b1[o]
        for t in range(L1):
            for j in range(4):
                i = t + j - 2
                if 0 <= i < L0:
                    m1[i, o * L1 + t] = w1[o, 0, j]

    # conv2 (2->4, k=2, s=2): (tb,72) @ (72,64); input row c*L1 + 2t + j.
    m2 = np.zeros((W1P, W2), np.float32)
    b2v = np.repeat(b2, L2).astype(np.float32)
    for o in range(4):
        for c in range(2):
            for t in range(L2):
                for j in range(2):
                    m2[c * L1 + 2 * t + j, o * L2 + t] = w2[o, c, j]

    # conv3 (4->4, k=1): per-position channel mixing, (64,64).
    m3 = np.zeros((W2, W2), np.float32)
    b3v = np.repeat(b3, L2).astype(np.float32)
    for o in range(4):
        for c in range(4):
            for t in range(L2):
                m3[c * L2 + t, o * L2 + t] = w3[o, c, 0]

    # conv4 (4->1, k=1): (64, N) — real output width only (lane-exact out).
    m4 = np.zeros((W2, N), np.float32)
    b4v = np.full((N,), b4[0], np.float32)
    for c in range(4):
        for t in range(L2):
            m4[c * L2 + t, t] = w4[0, c, 0]

    # Pack weights: each matrix in a row band starting at a multiple of 8,
    # occupying lanes [0, cols) of a 128-lane slab.
    rT = _rup8(T)
    o1 = rT
    o2 = o1 + L0
    o3 = o2 + W1P
    o4 = o3 + W2
    R = o4 + W2
    wslab = np.zeros((R, 128), np.float32)
    wslab[0:T, 0:L0] = wlin.T
    wslab[o1:o1 + L0, 0:W1P] = m1
    wslab[o2:o2 + W1P, 0:W2] = m2
    wslab[o3:o3 + W2, 0:W2] = m3
    wslab[o4:o4 + W2, 0:N] = m4

    # Pack biases: bias i at lanes [128*i, 128*i + width_i) of row 0.
    bslab = np.zeros((8, 5 * BLANE), np.float32)
    bslab[0, 0:L0] = blin
    bslab[0, BLANE:BLANE + W1P] = b1v
    bslab[0, 2 * BLANE:2 * BLANE + W2] = b2v
    bslab[0, 3 * BLANE:3 * BLANE + W2] = b3v
    bslab[0, 4 * BLANE:4 * BLANE + N] = b4v

    return {"wslab": jnp.asarray(wslab),
            "bslab": jnp.asarray(bslab),
            "offs": (T, o1, o2, o3, o4)}


# --------------------------------------------------------------------------
# Deterministic parameter init (shapes from Model.__init__) + JAX reference
# --------------------------------------------------------------------------
def init_params(key, text_size, key_size=None):
    in_dim = text_size + (key_size if key_size is not None else 0)
    ks = jax.random.split(key, 10)

    def u(k, shape, fan_in):
        bound = 1.0 / (fan_in ** 0.5)
        return jax.random.uniform(k, shape, jnp.float32, -bound, bound)

    return {
        "wlin": u(ks[0], (2 * N, in_dim), in_dim),
        "blin": u(ks[1], (2 * N,), in_dim),
        "w1": u(ks[2], (2, 1, 4), 1 * 4), "b1": u(ks[3], (2,), 1 * 4),
        "w2": u(ks[4], (4, 2, 2), 2 * 2), "b2": u(ks[5], (4,), 2 * 2),
        "w3": u(ks[6], (4, 4, 1), 4 * 1), "b3": u(ks[7], (4,), 4 * 1),
        "w4": u(ks[8], (1, 4, 1), 4 * 1), "b4": u(ks[9], (1,), 4 * 1),
    }


def reference_forward(x, p):
    """Pure-JAX mirror of the PyTorch forward (for correctness check)."""
    def conv1d(inp, w, b, stride, pad):
        out = lax.conv_general_dilated(
            inp, w, window_strides=(stride,), padding=[(pad, pad)],
            dimension_numbers=("NCH", "OIH", "NCH"))
        return out + b[None, :, None]

    h = jax.nn.sigmoid(x @ p["wlin"].T + p["blin"])[:, None, :]   # (B,1,2N)
    h = jax.nn.sigmoid(conv1d(h, p["w1"], p["b1"], 1, 2))
    h = jax.nn.sigmoid(conv1d(h, p["w2"], p["b2"], 2, 0))
    h = jax.nn.sigmoid(conv1d(h, p["w3"], p["b3"], 1, 0))
    h = jnp.tanh(conv1d(h, p["w4"], p["b4"], 1, 0))
    return jnp.squeeze(h, 1)                                       # (B, N)


if __name__ == "__main__":
    key = jax.random.PRNGKey(0)
    k_param, k_x = jax.random.split(key)

    batch, text_size = 8, 16
    params = init_params(k_param, text_size, key_size=None)
    kparams = prepare_kernel_params(params)
    x = jax.random.uniform(k_x, (batch, text_size), jnp.float32, -1.0, 1.0)

    out = model_forward(x, kparams)
    out = jax.block_until_ready(out)

    ref = reference_forward(x, params)
    assert out.shape == (batch, N), out.shape
    if not jnp.allclose(out, ref, atol=2e-4, rtol=2e-4):
        raise AssertionError(
            f"Pallas kernel mismatch vs reference; max|diff|="
            f"{float(jnp.max(jnp.abs(out - ref)))}")
    print("KERNEL_OK")
</pallas_src>

<mosaic_0001>
module attributes {stable_mosaic.version = 11 : i64} {
  func.func @_model_kernel(%arg0: i32, %arg1: memref<8x16xf32, #tpu.memory_space<vmem>>, %arg2: memref<248x128xf32, #tpu.memory_space<vmem>>, %arg3: memref<8x640xf32, #tpu.memory_space<vmem>>, %arg4: memref<8x16xf32, #tpu.memory_space<vmem>>) attributes {dimension_semantics = [#tpu.dimension_semantics<parallel>], iteration_bounds = array<i64: 1>, scalar_prefetch = 0 : i64, scratch_operands = 0 : i64, tpu.core_type = #tpu.core_type<tc>, window_params = [{transform_indices = @transform_0, window_bounds = array<i64: 8, 16>}, {pipeline_mode = #tpu.pipeline_mode<synchronous>, transform_indices = @transform_1, window_bounds = array<i64: 248, 128>}, {pipeline_mode = #tpu.pipeline_mode<synchronous>, transform_indices = @transform_2, window_bounds = array<i64: 8, 640>}, {transform_indices = @transform_3, window_bounds = array<i64: 8, 16>}]} {
    %c0 = arith.constant 0 : index
    %c0_0 = arith.constant 0 : index
    %0 = vector.load %arg1[%c0, %c0_0] : memref<8x16xf32, #tpu.memory_space<vmem>>, vector<8x16xf32>
    %c0_1 = arith.constant 0 : index
    %c0_2 = arith.constant 0 : index
    %1 = vector.load %arg2[%c0_1, %c0_2] : memref<248x128xf32, #tpu.memory_space<vmem>>, vector<16x32xf32>
    %cst = arith.constant dense<0.000000e+00> : vector<8x32xf32>
    %2 = tpu.matmul %0, %1, %cst {dimension_numbers = #tpu.dot_dimension_numbers<[1], [0], [0], [1], [0, 0, 1, 1], [], []>} : vector<8x16xf32>, vector<16x32xf32>, vector<8x32xf32> -> vector<8x32xf32>
    %c0_3 = arith.constant 0 : index
    %c0_4 = arith.constant 0 : index
    %3 = vector.load %arg3[%c0_3, %c0_4] : memref<8x640xf32, #tpu.memory_space<vmem>>, vector<1x32xf32>
    %4 = vector.broadcast %3 : vector<1x32xf32> to vector<8x32xf32>
    %5 = arith.addf %2, %4 : vector<8x32xf32>
    %cst_5 = arith.constant 5.000000e-01 : f32
    %6 = vector.broadcast %cst_5 : f32 to vector<8x32xf32>
    %7 = arith.mulf %6, %5 : vector<8x32xf32>
    %8 = math.tanh %7 : vector<8x32xf32>
    %cst_6 = arith.constant 5.000000e-01 : f32
    %9 = vector.broadcast %cst_6 : f32 to vector<8x32xf32>
    %10 = arith.mulf %9, %8 : vector<8x32xf32>
    %cst_7 = arith.constant 5.000000e-01 : f32
    %11 = vector.broadcast %cst_7 : f32 to vector<8x32xf32>
    %12 = arith.addf %10, %11 : vector<8x32xf32>
    %c16 = arith.constant 16 : index
    %c0_8 = arith.constant 0 : index
    %13 = vector.load %arg2[%c16, %c0_8] : memref<248x128xf32, #tpu.memory_space<vmem>>, vector<32x72xf32>
    %cst_9 = arith.constant dense<0.000000e+00> : vector<8x72xf32>
    %14 = tpu.matmul %12, %13, %cst_9 {dimension_numbers = #tpu.dot_dimension_numbers<[1], [0], [0], [1], [0, 0, 1, 1], [], []>} : vector<8x32xf32>, vector<32x72xf32>, vector<8x72xf32> -> vector<8x72xf32>
    %c0_10 = arith.constant 0 : index
    %c128 = arith.constant 128 : index
    %15 = vector.load %arg3[%c0_10, %c128] : memref<8x640xf32, #tpu.memory_space<vmem>>, vector<1x72xf32>
    %16 = vector.broadcast %15 : vector<1x72xf32> to vector<8x72xf32>
    %17 = arith.addf %14, %16 : vector<8x72xf32>
    %cst_11 = arith.constant 5.000000e-01 : f32
    %18 = vector.broadcast %cst_11 : f32 to vector<8x72xf32>
    %19 = arith.mulf %18, %17 : vector<8x72xf32>
    %20 = math.tanh %19 : vector<8x72xf32>
    %cst_12 = arith.constant 5.000000e-01 : f32
    %21 = vector.broadcast %cst_12 : f32 to vector<8x72xf32>
    %22 = arith.mulf %21, %20 : vector<8x72xf32>
    %cst_13 = arith.constant 5.000000e-01 : f32
    %23 = vector.broadcast %cst_13 : f32 to vector<8x72xf32>
    %24 = arith.addf %22, %23 : vector<8x72xf32>
    %c48 = arith.constant 48 : index
    %c0_14 = arith.constant 0 : index
    %25 = vector.load %arg2[%c48, %c0_14] : memref<248x128xf32, #tpu.memory_space<vmem>>, vector<72x64xf32>
    %cst_15 = arith.constant dense<0.000000e+00> : vector<8x64xf32>
    %26 = tpu.matmul %24, %25, %cst_15 {dimension_numbers = #tpu.dot_dimension_numbers<[1], [0], [0], [1], [0, 0, 1, 1], [], []>} : vector<8x72xf32>, vector<72x64xf32>, vector<8x64xf32> -> vector<8x64xf32>
    %c0_16 = arith.constant 0 : index
    %c256 = arith.constant 256 : index
    %27 = vector.load %arg3[%c0_16, %c256] : memref<8x640xf32, #tpu.memory_space<vmem>>, vector<1x64xf32>
    %28 = vector.broadcast %27 : vector<1x64xf32> to vector<8x64xf32>
    %29 = arith.addf %26, %28 : vector<8x64xf32>
    %cst_17 = arith.constant 5.000000e-01 : f32
    %30 = vector.broadcast %cst_17 : f32 to vector<8x64xf32>
    %31 = arith.mulf %30, %29 : vector<8x64xf32>
    %32 = math.tanh %31 : vector<8x64xf32>
    %cst_18 = arith.constant 5.000000e-01 : f32
    %33 = vector.broadcast %cst_18 : f32 to vector<8x64xf32>
    %34 = arith.mulf %33, %32 : vector<8x64xf32>
    %cst_19 = arith.constant 5.000000e-01 : f32
    %35 = vector.broadcast %cst_19 : f32 to vector<8x64xf32>
    %36 = arith.addf %34, %35 : vector<8x64xf32>
    %c120 = arith.constant 120 : index
    %c0_20 = arith.constant 0 : index
    %37 = vector.load %arg2[%c120, %c0_20] : memref<248x128xf32, #tpu.memory_space<vmem>>, vector<64x64xf32>
    %cst_21 = arith.constant dense<0.000000e+00> : vector<8x64xf32>
    %38 = tpu.matmul %36, %37, %cst_21 {dimension_numbers = #tpu.dot_dimension_numbers<[1], [0], [0], [1], [0, 0, 1, 1], [], []>} : vector<8x64xf32>, vector<64x64xf32>, vector<8x64xf32> -> vector<8x64xf32>
    %c0_22 = arith.constant 0 : index
    %c384 = arith.constant 384 : index
    %39 = vector.load %arg3[%c0_22, %c384] : memref<8x640xf32, #tpu.memory_space<vmem>>, vector<1x64xf32>
    %40 = vector.broadcast %39 : vector<1x64xf32> to vector<8x64xf32>
    %41 = arith.addf %38, %40 : vector<8x64xf32>
    %cst_23 = arith.constant 5.000000e-01 : f32
    %42 = vector.broadcast %cst_23 : f32 to vector<8x64xf32>
    %43 = arith.mulf %42, %41 : vector<8x64xf32>
    %44 = math.tanh %43 : vector<8x64xf32>
    %cst_24 = arith.constant 5.000000e-01 : f32
    %45 = vector.broadcast %cst_24 : f32 to vector<8x64xf32>
    %46 = arith.mulf %45, %44 : vector<8x64xf32>
    %cst_25 = arith.constant 5.000000e-01 : f32
    %47 = vector.broadcast %cst_25 : f32 to vector<8x64xf32>
    %48 = arith.addf %46, %47 : vector<8x64xf32>
    %c184 = arith.constant 184 : index
    %c0_26 = arith.constant 0 : index
    %49 = vector.load %arg2[%c184, %c0_26] : memref<248x128xf32, #tpu.memory_space<vmem>>, vector<64x16xf32>
    %cst_27 = arith.constant dense<0.000000e+00> : vector<8x16xf32>
    %50 = tpu.matmul %48, %49, %cst_27 {dimension_numbers = #tpu.dot_dimension_numbers<[1], [0], [0], [1], [0, 0, 1, 1], [], []>} : vector<8x64xf32>, vector<64x16xf32>, vector<8x16xf32> -> vector<8x16xf32>
    %c0_28 = arith.constant 0 : index
    %c512 = arith.constant 512 : index
    %51 = vector.load %arg3[%c0_28, %c512] : memref<8x640xf32, #tpu.memory_space<vmem>>, vector<1x16xf32>
    %52 = vector.broadcast %51 : vector<1x16xf32> to vector<8x16xf32>
    %53 = arith.addf %50, %52 : vector<8x16xf32>
    %54 = math.tanh %53 : vector<8x16xf32>
    %c0_29 = arith.constant 0 : index
    %c0_30 = arith.constant 0 : index
    %55 = vector.load %arg4[%c0_29, %c0_30] : memref<8x16xf32, #tpu.memory_space<vmem>>, vector<8x16xf32>
    tpu.vector_store %arg4[%c0_29, %c0_30], %54 {strides = array<i32>} : memref<8x16xf32, #tpu.memory_space<vmem>>, vector<8x16xf32>,
    return
  }
  func.func @transform_0(%arg0: i32) -> (i32, i32) {
    %c0_i32 = arith.constant 0 : i32
    %c0_i32_0 = arith.constant 0 : i32
    return %arg0, %c0_i32 : i32, i32
  }
  func.func @transform_1(%arg0: i32) -> (i32, i32) {
    %c0_i32 = arith.constant 0 : i32
    %c0_i32_0 = arith.constant 0 : i32
    %c0_i32_1 = arith.constant 0 : i32
    return %c0_i32, %c0_i32_0 : i32, i32
  }
  func.func @transform_2(%arg0: i32) -> (i32, i32) {
    %c0_i32 = arith.constant 0 : i32
    %c0_i32_0 = arith.constant 0 : i32
    %c0_i32_1 = arith.constant 0 : i32
    return %c0_i32, %c0_i32_0 : i32, i32
  }
  func.func @transform_3(%arg0: i32) -> (i32, i32) {
    %c0_i32 = arith.constant 0 : i32
    %c0_i32_0 = arith.constant 0 : i32
    return %arg0, %c0_i32 : i32, i32
  }
}

</mosaic_0001>

<bundles_post_ra>
// kernel: tpu_custom_call.1
= control target key start
LH: loop header
LB: loop body
LE: loop exit
PB: predicated region body
PF: predicated region fallthrough
CT: control target
= control target key end

     0   :  { %8 = vsyncpa [#allocation3], 0  ;;  %s799_s0 = inlined_call_operand.hbm [shape: f32[8,16], index: 0, kind: input, shape index: {}]   ;;  %s800_s1 = inlined_call_operand.hbm [shape: f32[248,128], index: 1, kind: input, shape index: {}]   ;;  %s801_s2 = inlined_call_operand.hbm [shape: f32[8,640], index: 2, kind: input, shape index: {}]   ;;  %s802_s3 = inlined_call_operand.hbm [shape: f32[8,16], index: 3, kind: output, shape index: {}]  }
   0x1   :  { %9 = vsyncpa [#allocation6], 0 }
   0x2   :  { %10 = vsyncpa [#allocation4], 0  ;;  %s714_s12 = smov [#allocation5]  }
   0x3   :  { %s26_s13 = sshll.u32 %s714_s12, 4  ;;  %s27_s13 = int_to_ptr.vmem [resolvable:$true] %s26_s13 }
   0x4   :  { %s636_s14 = scalar_lea.vmem %s27_s13, 3968  ;;  %p641_p1 = scmp.lt.s32.totalorder %s27_s13, %s27_s13 }
   0x5   :  { %p637_p0 = scmp.ne.s32.totalorder %s27_s13, %s636_s14  ;;  %p642_p2 = scmp.lt.s32.totalorder %s636_s14, %s636_s14 }
   0x7   :  { %p643_p3 = por %p642_p2, %p641_p1 }
   0x9   :  { %p644_p4 = pnand %p643_p3, %p637_p0 }
   0xb   :  { %647 = shalt.err (!%p644_p4)
}
   0xc   :  { %s715_s15 = smov 128   ;;  %s716_s16 = smov 8  }
   0xd   :  { %32 = dma.hbm_to_vmem [thread:$0]  %s800_s1, 3968, %s27_s13, [#allocation6], %s715_s15, %s715_s15, %s716_s16  }
   0xe   :  { %s717_s19 = smov [#allocation2]   ;;  %s718_s21 = smov [#allocation7]  }
   0xf   :  { %s17_s20 = sshll.u32 %s717_s19, 4  ;;  %s39_s22 = sshll.u32 %s718_s21, 4  ;;  %s18_s20 = int_to_ptr.vmem [resolvable:$true] %s17_s20  ;;  %s40_s22 = int_to_ptr.vmem [resolvable:$true] %s39_s22 }
  0x10   :  { %s656_s23 = scalar_lea.vmem %s18_s20, 128  ;;  %p661_p6 = scmp.lt.s32.totalorder %s18_s20, %s18_s20 }
  0x11   :  { %p657_p5 = scmp.ne.s32.totalorder %s18_s20, %s656_s23  ;;  %p662_p7 = scmp.lt.s32.totalorder %s656_s23, %s656_s23 }
  0x13   :  { %p663_p8 = por %p662_p7, %p661_p6 }
  0x15   :  { %p664_p9 = pnand %p663_p8, %p657_p5 }
  0x17   :  { %667 = shalt.err (!%p664_p9)
}
  0x18   :  { %20 = dma.hbm_to_vmem [thread:$0]  %s799_s0, 128, %s18_s20, [#allocation3]  }
  0x19   :  { %s676_s26 = scalar_lea.vmem %s40_s22, 640  ;;  %p681_p11 = scmp.lt.s32.totalorder %s40_s22, %s40_s22 }
  0x1a   :  { %p677_p10 = scmp.ne.s32.totalorder %s40_s22, %s676_s26  ;;  %p682_p12 = scmp.lt.s32.totalorder %s676_s26, %s676_s26 }
  0x1c   :  { %p683_p13 = por %p682_p12, %p681_p11 }
  0x1e   :  { %p684_p0 = pnand %p683_p13, %p677_p10 }
  0x20   :  { %687 = shalt.err (!%p684_p0)
}
  0x21   :  { %42 = dma.hbm_to_vmem [thread:$0]  %s801_s2, 640, %s40_s22, [#allocation6]  }
  0x22   :  { %708 = dma.done.wait [#allocation3], 128  }
  0x23   :  { %709 = vsyncadd [#allocation3], 4294967168 }
  0x24   :  { %710 = dma.done.wait [#allocation6], 4608  }
  0x25   :  { %711 = vsyncadd [#allocation6], 4294962688  ;;  %v719_v0 = vmov 0.0   ;;  %vm720_vm0 = vmmov 0   ;;  %v54_v1 = vld [vmem:[#allocation5 + $0x8] sm:$0xff]  ;;  %v53_v2 = vld [vmem:[#allocation5] sm:$0xff] }
  0x26   :  { %533 = vmatprep.subr.mxu1 %v719_v0  ;;  %537 = vmatprep.mubr.msk.f32.mxu1 %vm720_vm0, %v719_v0  ;;  %v52_v3 = vld [vmem:[#allocation2] sm:$0xff]  ;;  %vm56_vm1 = vcmask 130048   ;;  %v137_v4 = vld [vmem:[#allocation5 + $0x28] sm:$0xff]  ;;  %v136_v5 = vld [vmem:[#allocation5 + $0x20] sm:$0xff]  ;;  %vm139_vm2 = vcmask 261120   ;;  %vm227_vm3 = vcmask 588800  }
  0x27   :  { %551 = vmatprep.subr.mxu0 %v719_v0  ;;  %569 = vmatprep.mubr.msk.f32.mxu0 %vm720_vm0, %v719_v0  ;;  %v135_v6 = vld [vmem:[#allocation5 + $0x18] sm:$0xff]  ;;  %v134_v7 = vld [vmem:[#allocation5 + $0x10] sm:$0xff]  ;;  %v224_v17 = vld [vmem:[#allocation5 + $0x68] sm:$0xff]  ;;  %vm314_vm4 = vcmask 523264   ;;  %s721_s0 = smov [#allocation8]  }
  0x28   :  { %534 = vmatpush3.msra.mxu1 %v54_v1  ;;  %v55_v8 = vld [vmem:[#allocation7] ss:$0 sm:$0xff]  ;;  %v225_v16 = vld [vmem:[#allocation5 + $0x70] sm:$0xff]  ;;  %v223_v18 = vld [vmem:[#allocation5 + $0x60] sm:$0xff]  ;;  %s482_s2 = sshll.u32 %s721_s0, 4  ;;  %s483_s2 = int_to_ptr.vmem [resolvable:$true] %s482_s2 }
  0x29   :  { %535 = vmatprep.subr.mxu1 %v719_v0  ;;  %552 = vmatpush3.msra.mxu0 %v225_v16  ;;  %v222_v19 = vld [vmem:[#allocation5 + $0x58] sm:$0xff]  ;;  %v221_v20 = vld [vmem:[#allocation5 + $0x50] sm:$0xff]  ;;  %v220_v21 = vld [vmem:[#allocation5 + $0x48] sm:$0xff]  ;;  %s688_s28 = scalar_lea.vmem %s483_s2, 128  ;;  %p693_p2 = scmp.lt.s32.totalorder %s483_s2, %s483_s2 }
  0x2a   :  { %536 = vmatpush3.msra.mxu1 %v53_v2  ;;  %553 = vmatprep.subr.mxu0 %v719_v0  ;;  %v219_v22 = vld [vmem:[#allocation5 + $0x40] sm:$0xff]  ;;  %v218_v23 = vld [vmem:[#allocation5 + $0x38] sm:$0xff]  ;;  %v217_v24 = vld [vmem:[#allocation5 + $0x30] sm:$0xff]  ;;  %p689_p1 = scmp.ne.s32.totalorder %s483_s2, %s688_s28  ;;  %p694_p3 = scmp.lt.s32.totalorder %s688_s28, %s688_s28 }
  0x2b   :  { %538 = vmatmul.mubr.msk.f32.vlgmr.msra.gmra.mxu1 %vm56_vm1, %v52_v3  ;;  %540 = vmatprep.subr.mxu1 %v719_v0  ;;  %v138_v25 = vld [vmem:[#allocation7 + $0x8] ss:$0 sm:$0xff]  ;;  %v312_v33 = vld [vmem:[#allocation5 + $0xb0] sm:$0xff]  ;;  %v311_v34 = vld [vmem:[#allocation5 + $0xa8] sm:$0xff] }
  0x2c   :  { %548 = vmatprep.mubr.msk.f32.mxu1 %vm720_vm0, %v719_v0  ;;  %541 = vmatpush3.msra.mxu1 %v137_v4  ;;  %v310_v35 = vld [vmem:[#allocation5 + $0xa0] sm:$0xff]  ;;  %v309_v36 = vld [vmem:[#allocation5 + $0x98] sm:$0xff]  ;;  %v308_v37 = vld [vmem:[#allocation5 + $0x90] sm:$0xff]  ;;  %p695_p4 = por %p694_p3, %p693_p2 }
  0x2d   :  { %542 = vmatprep.subr.mxu1 %v719_v0  ;;  %554 = vmatpush3.msra.mxu0 %v224_v17  ;;  %v307_v38 = vld [vmem:[#allocation5 + $0x88] sm:$0xff]  ;;  %v306_v39 = vld [vmem:[#allocation5 + $0x80] sm:$0xff]  ;;  %v305_v40 = vld [vmem:[#allocation5 + $0x78] sm:$0xff] }
  0x2e   :  { %543 = vmatpush3.msra.mxu1 %v136_v5  ;;  %555 = vmatprep.subr.mxu0 %v719_v0  ;;  %v226_v41 = vld [vmem:[#allocation7 + $0x10] ss:$0 sm:$0xff]  ;;  %v399_v49 = vld [vmem:[#allocation5 + $0xf0] sm:$0xff]  ;;  %v397_v51 = vld [vmem:[#allocation5 + $0xe0] sm:$0xff]  ;;  %p696_p5 = pnand %p695_p4, %p689_p1 }
  0x2f   :  { %544 = vmatprep.subr.mxu1 %v719_v0  ;;  %556 = vmatpush3.msra.mxu0 %v223_v18  ;;  %v398_v50 = vld [vmem:[#allocation5 + $0xe8] sm:$0xff]  ;;  %v396_v52 = vld [vmem:[#allocation5 + $0xd8] sm:$0xff]  ;;  %v395_v53 = vld [vmem:[#allocation5 + $0xd0] sm:$0xff] }
  0x30   :  { %545 = vmatpush3.msra.mxu1 %v135_v6  ;;  %557 = vmatprep.subr.mxu0 %v719_v0  ;;  %v394_v54 = vld [vmem:[#allocation5 + $0xc8] sm:$0xff]  ;;  %v393_v55 = vld [vmem:[#allocation5 + $0xc0] sm:$0xff]  ;;  %v392_v56 = vld [vmem:[#allocation5 + $0xb8] sm:$0xff] }
  0x31   :  { %546 = vmatprep.subr.mxu1 %v719_v0  ;;  %558 = vmatpush3.msra.mxu0 %v222_v19  ;;  %v313_v57 = vld [vmem:[#allocation7 + $0x18] ss:$0 sm:$0xff]  ;;  %v400_v2 = vld [vmem:[#allocation7 + $0x20] ss:$0 sm:$0xff] }
  0x32   :  { %547 = vmatpush3.msra.mxu1 %v134_v7  ;;  %559 = vmatprep.subr.mxu0 %v719_v0 }
  0x33   :  { %572 = vmatprep.subr.mxu1 %v719_v0  ;;  %560 = vmatpush3.msra.mxu0 %v221_v20 }
  0x34   :  { %561 = vmatprep.subr.mxu0 %v719_v0 }
  0x35   :  { %562 = vmatpush3.msra.mxu0 %v220_v21 }
  0x36   :  { %563 = vmatprep.subr.mxu0 %v719_v0 }
  0x37   :  { %564 = vmatpush3.msra.mxu0 %v219_v22 }
  0x38   :  { %565 = vmatprep.subr.mxu0 %v719_v0 }
  0x39   :  { %566 = vmatpush3.msra.mxu0 %v218_v23 }
  0x3a   :  { %567 = vmatprep.subr.mxu0 %v719_v0 }
  0x3b   :  { %568 = vmatpush3.msra.mxu0 %v217_v24 }
  0x3c   :  { %591 = vmatprep.subr.mxu0 %v719_v0 }
  0xeb   :  { %v126_v9 = vpop.f32.mrf.mxu1 }
  0xec   :  { %v127_v10 = vadd.f32 %v126_v9, %v55_v8 }
  0xed   :  { %v539_v11 = vpop.f32.mrf.mxu1 }
  0xee   :  { %v130_v12 = vmul.f32 0.5, %v127_v10 }
  0xf0   :  { %618 = vtanh.f32 %v130_v12 }
  0xfd   :  { %v619_v13 = vpop.eup %618 }
  0xfe   :  { %v132_v14 = vmul.f32 0.5, %v619_v13 }
 0x100   :  { %v133_v15 = vadd.f32 0.5, %v132_v14 }
 0x102   :  { %549 = vmatmul.mubr.msk.f32.vlgmr.msra.gmra.mxu1 %vm139_vm2, %v133_v15 }
 0x103   :  { %588 = vmatprep.mubr.msk.f32.mxu1 %vm720_vm0, %v719_v0  ;;  %573 = vmatpush3.msra.mxu1 %v312_v33 }
 0x104   :  { %574 = vmatprep.subr.mxu1 %v719_v0 }
 0x105   :  { %575 = vmatpush3.msra.mxu1 %v311_v34 }
 0x106   :  { %576 = vmatprep.subr.mxu1 %v719_v0 }
 0x107   :  { %577 = vmatpush3.msra.mxu1 %v310_v35 }
 0x108   :  { %578 = vmatprep.subr.mxu1 %v719_v0 }
 0x109   :  { %579 = vmatpush3.msra.mxu1 %v309_v36 }
 0x10a   :  { %580 = vmatprep.subr.mxu1 %v719_v0 }
 0x10b   :  { %581 = vmatpush3.msra.mxu1 %v308_v37 }
 0x10c   :  { %582 = vmatprep.subr.mxu1 %v719_v0 }
 0x10d   :  { %583 = vmatpush3.msra.mxu1 %v307_v38 }
 0x10e   :  { %584 = vmatprep.subr.mxu1 %v719_v0 }
 0x10f   :  { %585 = vmatpush3.msra.mxu1 %v306_v39 }
 0x110   :  { %586 = vmatprep.subr.mxu1 %v719_v0 }
 0x111   :  { %587 = vmatpush3.msra.mxu1 %v305_v40 }
 0x1c2   :  { %v209_v26 = vpop.f32.mrf.mxu1 }
 0x1c3   :  { %v210_v27 = vadd.f32 %v209_v26, %v138_v25 }
 0x1c4   :  { %v550_v28 = vpop.f32.mrf.mxu1 }
 0x1c5   :  { %v213_v29 = vmul.f32 0.5, %v210_v27 }
 0x1c7   :  { %620 = vtanh.f32 %v213_v29 }
 0x1d4   :  { %v621_v30 = vpop.eup %620 }
 0x1d5   :  { %v215_v31 = vmul.f32 0.5, %v621_v30 }
 0x1d7   :  { %v216_v32 = vadd.f32 0.5, %v215_v31 }
 0x1d9   :  { %570 = vmatmul.mubr.msk.f32.vlgmr.msra.gmra.mxu0 %vm227_vm3, %v216_v32 }
 0x1da   :  { %607 = vmatprep.mubr.msk.f32.mxu0 %vm720_vm0, %v719_v0  ;;  %592 = vmatpush3.msra.mxu0 %v399_v49 }
 0x1db   :  { %593 = vmatprep.subr.mxu0 %v719_v0 }
 0x1dc   :  { %594 = vmatpush3.msra.mxu0 %v398_v50 }
 0x1dd   :  { %595 = vmatprep.subr.mxu0 %v719_v0 }
 0x1de   :  { %596 = vmatpush3.msra.mxu0 %v397_v51 }
 0x1df   :  { %597 = vmatprep.subr.mxu0 %v719_v0 }
 0x1e0   :  { %598 = vmatpush3.msra.mxu0 %v396_v52 }
 0x1e1   :  { %599 = vmatprep.subr.mxu0 %v719_v0 }
 0x1e2   :  { %600 = vmatpush3.msra.mxu0 %v395_v53 }
 0x1e3   :  { %601 = vmatprep.subr.mxu0 %v719_v0 }
 0x1e4   :  { %602 = vmatpush3.msra.mxu0 %v394_v54 }
 0x1e5   :  { %603 = vmatprep.subr.mxu0 %v719_v0 }
 0x1e6   :  { %604 = vmatpush3.msra.mxu0 %v393_v55 }
 0x1e7   :  { %605 = vmatprep.subr.mxu0 %v719_v0 }
 0x1e8   :  { %606 = vmatpush3.msra.mxu0 %v392_v56 }
 0x299   :  { %v297_v42 = vpop.f32.mrf.mxu0 }
 0x29a   :  { %v298_v43 = vadd.f32 %v297_v42, %v226_v41 }
 0x29b   :  { %v571_v44 = vpop.f32.mrf.mxu0 }
 0x29c   :  { %v301_v45 = vmul.f32 0.5, %v298_v43 }
 0x29e   :  { %622 = vtanh.f32 %v301_v45 }
 0x2ab   :  { %v623_v46 = vpop.eup %622 }
 0x2ac   :  { %v303_v47 = vmul.f32 0.5, %v623_v46 }
 0x2ae   :  { %v304_v48 = vadd.f32 0.5, %v303_v47 }
 0x2b0   :  { %589 = vmatmul.mubr.msk.f32.vlgmr.msra.gmra.mxu1 %vm314_vm4, %v304_v48 }
 0x370   :  { %v384_v58 = vpop.f32.mrf.mxu1 }
 0x371   :  { %v385_v59 = vadd.f32 %v384_v58, %v313_v57 }
 0x372   :  { %v590_v60 = vpop.f32.mrf.mxu1 }
 0x373   :  { %v388_v61 = vmul.f32 0.5, %v385_v59 }
 0x375   :  { %624 = vtanh.f32 %v388_v61 }
 0x382   :  { %v625_v62 = vpop.eup %624 }
 0x383   :  { %v390_v63 = vmul.f32 0.5, %v625_v62 }
 0x385   :  { %v391_v1 = vadd.f32 0.5, %v390_v63 }
 0x387   :  { %608 = vmatmul.mubr.msk.f32.vlgmr.msra.gmra.mxu0 %vm314_vm4, %v391_v1 }
 0x447   :  { %v470_v3 = vpop.f32.mrf.mxu0 }
 0x448   :  { %v471_v4 = vadd.f32 %v470_v3, %v400_v2 }
 0x449   :  { %v609_v5 = vpop.f32.mrf.mxu0 }
 0x44a   :  { %626 = vtanh.f32 %v471_v4 }
 0x457   :  { %v627_v0 = vpop.eup %626 }
 0x458   :  { %475 = vst.msk [vmem:[#allocation8] sm:$0xff] %vm56_vm1, %v627_v0 }
 0x459   :  { %699 = shalt.err (!%p696_p5)
}
 0x45a   :  { %485 = dma.vmem_to_hbm [thread:$0]  %s483_s2, 128, %s802_s3, [#allocation4]  }
 0x45b   :  { %712 = dma.done.wait [#allocation4], 128  }
 0x45c   :  { %713 = vsyncadd [#allocation4], 4294967168 }
 0x45d   :  { %489 = vsyncpa [#allocation3], 1 }
 0x45e   :  { %490 = vsyncpa [#allocation6], 1 }
 0x45f   :  { %491 = vsyncpa [#allocation4], 1 }

</bundles_post_ra>
